<compile_context>
chip_gen: v7x
topology: tpu7x:2x2x1
jax: 0.10.0
libtpu: 0.0.40
codegen_flags: <defaults>
</compile_context>

<pallas_src>
import jax
import jax.numpy as jnp
from jax.experimental import pallas as pl
from jax.experimental.pallas import tpu as pltpu

LANES = 128


def _min_sublanes(dtype) -> int:
    # Sublane packing requirement: f32 -> 8, bf16/f16 -> 16, 8-bit -> 32.
    return max(8, 32 // jnp.dtype(dtype).itemsize)


def _chip_config():
    """Return (num_parallel_chunks, tm_max) for the local TPU generation."""
    try:
        kind = jax.devices()[0].device_kind.lower()
    except Exception:
        kind = ""
    if "v7" in kind:
        # 2 TCs/chip, ~3.2 TB/s/TC: split across cores, big tiles to amortize
        # the per-step overhead (16 MiB double-buffered < 32 MiB scoped VMEM).
        return 2, 8192
    if "v6" in kind:
        return 1, 4096          # 8 MiB double-buffered, well under 32 MiB scoped
    if "v5" in kind:
        return 1, 4096          # 8 MiB double-buffered, under v5e's 16 MiB scoped
    return 1, 2048              # unknown chip: conservative


def _make_kernel(total_rows: int, tm: int, bpc: int):
    def kernel(x_ref, t_ref, o_ref):
        c = pl.program_id(0)   # chunk (one per TensorCore on v7x)
        i = pl.program_id(1)   # sequential reduction step within the chunk

        @pl.when(i == 0)
        def _():
            o_ref[...] = jnp.zeros_like(o_ref)

        x = x_ref[...].astype(jnp.float32)
        t = t_ref[...].astype(jnp.float32)

        # PyTorch clamps both log terms at -100 for numerical stability.
        log_x = jnp.maximum(jnp.log(x), -100.0)
        log_1mx = jnp.maximum(jnp.log1p(-x), -100.0)
        # Folded:  t*log_x + (1-t)*log_1mx  ==  t*(log_x - log_1mx) + log_1mx
        # (global negation is applied in the wrapper's final scale).
        s = t * (log_x - log_1mx) + log_1mx

        block_idx = c * bpc + i
        valid_rows = total_rows - block_idx * tm

        @pl.when(valid_rows >= tm)
        def _():
            # Fast path: full interior block — no mask, VPU adds only.
            o_ref[...] += s.reshape(tm // 8, 8, LANES).sum(axis=0)[None]

        @pl.when(valid_rows < tm)
        def _():
            # Boundary path: last partial block / duplicated overhang blocks.
            # Keep this a select (not mul-by-mask): unspecified boundary data can
            # yield NaN/Inf from log(), and 0*NaN would poison the accumulator.
            row_ids = jax.lax.broadcasted_iota(jnp.int32, (tm, LANES), 0)
            sm = jnp.where(row_ids < valid_rows, s, 0.0)
            o_ref[...] += sm.reshape(tm // 8, 8, LANES).sum(axis=0)[None]

    return kernel


def bce_loss(input_probs: jax.Array, target: jax.Array) -> jax.Array:
    """Mean binary cross-entropy over all elements (matches torch.nn.BCELoss)."""
    assert input_probs.shape == target.shape
    n = int(input_probs.size)
    assert n > 0

    num_parallel, tm_max = _chip_config()

    x = input_probs.reshape(-1)   # native dtype, no wrapper-side cast
    t = target.reshape(-1)

    sub = max(_min_sublanes(x.dtype), _min_sublanes(t.dtype))
    chunk = sub * LANES
    n_pad = ((n + chunk - 1) // chunk) * chunk
    pad = n_pad - n
    if pad:
        # Zero-loss padding (x=1, t=1):  t*(0-(-100)) + (-100) = 0.
        # Only triggers when n is not a multiple of sub*128; mean still divides by true n.
        x = jnp.pad(x, (0, pad), constant_values=1)
        t = jnp.pad(t, (0, pad), constant_values=1)

    rows = n_pad // LANES
    x2 = x.reshape(rows, LANES)
    t2 = t.reshape(rows, LANES)

    tm = min(tm_max, rows)          # multiple of `sub` by construction
    blocks = -(-rows // tm)         # ceil-div: total row blocks
    p = min(num_parallel, blocks)   # parallel chunks (2 only on v7x)
    bpc = -(-blocks // p)           # reduction steps per chunk

    def in_index(c, i):
        # Clamp so overhanging / duplicated blocks never index out of bounds;
        # the kernel zeroes their contribution via the logical-block-index mask.
        return (jnp.minimum(c * bpc + i, blocks - 1), 0)

    if p > 1:
        # Force the row split onto both TensorCores on v7x; plain "parallel"
        # is not guaranteed to use both cores. Fallback keeps older builds alive.
        lead_sem = getattr(pltpu, "CORE_PARALLEL", "parallel")
    else:
        lead_sem = "arbitrary"

    out = pl.pallas_call(
        _make_kernel(rows, tm, bpc),
        out_shape=jax.ShapeDtypeStruct((p, 8, LANES), jnp.float32),
        grid=(p, bpc),
        in_specs=[
            pl.BlockSpec((tm, LANES), in_index),
            pl.BlockSpec((tm, LANES), in_index),
        ],
        out_specs=pl.BlockSpec((1, 8, LANES), lambda c, i: (c, 0, 0)),
        compiler_params=pltpu.CompilerParams(
            dimension_semantics=(lead_sem, "arbitrary"),
        ),
    )(x2, t2)

    # Single tiny final reduction; negation + mean scaling folded into one scale.
    return jnp.sum(out) * (-1.0 / n)


if __name__ == "__main__":
    key = jax.random.PRNGKey(0)
    kx, kt = jax.random.split(key)

    # Small NCHW-shaped probabilities/targets, consistent with a segmentation loss.
    shape = (2, 4, 16, 16)
    input_probs = jax.nn.sigmoid(jax.random.normal(kx, shape, dtype=jnp.float32))
    target = (jax.random.uniform(kt, shape) > 0.5).astype(jnp.float32)

    loss = bce_loss(input_probs, target)
    jax.block_until_ready(loss)

    # Reference check (plain JAX, same clamped-log semantics as torch BCELoss).
    ref = jnp.mean(
        -(
            target * jnp.maximum(jnp.log(input_probs), -100.0)
            + (1.0 - target) * jnp.maximum(jnp.log1p(-input_probs), -100.0)
        )
    )
    assert jnp.allclose(loss, ref, rtol=1e-5, atol=1e-6), (loss, ref)

    print("KERNEL_OK")
</pallas_src>

<mosaic_0001>
module attributes {stable_mosaic.version = 11 : i64} {
  func.func @kernel(%arg0: i32, %arg1: i32, %arg2: memref<16x128xf32, #tpu.memory_space<vmem>>, %arg3: memref<16x128xf32, #tpu.memory_space<vmem>>, %arg4: memref<1x8x128xf32, #tpu.memory_space<vmem>>) attributes {dimension_semantics = [#tpu.dimension_semantics<arbitrary>, #tpu.dimension_semantics<arbitrary>], iteration_bounds = array<i64: 1, 1>, scalar_prefetch = 0 : i64, scratch_operands = 0 : i64, tpu.core_type = #tpu.core_type<tc>, window_params = [{transform_indices = @transform_0, window_bounds = array<i64: 16, 128>}, {transform_indices = @transform_1, window_bounds = array<i64: 16, 128>}, {transform_indices = @transform_2, window_bounds = array<i64: 1, 8, 128>}]} {
    %c0_i32 = arith.constant 0 : i32
    %0 = arith.cmpi eq, %arg1, %c0_i32 : i32
    %1 = arith.extui %0 : i1 to i32
    %c0_i32_0 = arith.constant 0 : i32
    %2 = arith.cmpi ne, %1, %c0_i32_0 : i32
    scf.if %2 {
      %cst_11 = arith.constant 0.000000e+00 : f32
      %26 = vector.broadcast %cst_11 : f32 to vector<1x8x128xf32>
      %c0_12 = arith.constant 0 : index
      %c0_13 = arith.constant 0 : index
      %c0_14 = arith.constant 0 : index
      %27 = vector.load %arg4[%c0_12, %c0_13, %c0_14] : memref<1x8x128xf32, #tpu.memory_space<vmem>>, vector<1x8x128xf32>
      tpu.vector_store %arg4[%c0_12, %c0_13, %c0_14], %26 {strides = array<i32>} : memref<1x8x128xf32, #tpu.memory_space<vmem>>, vector<1x8x128xf32>,
    } else {
    }
    %c0 = arith.constant 0 : index
    %c0_1 = arith.constant 0 : index
    %3 = vector.load %arg2[%c0, %c0_1] : memref<16x128xf32, #tpu.memory_space<vmem>>, vector<16x128xf32>
    %c0_2 = arith.constant 0 : index
    %c0_3 = arith.constant 0 : index
    %4 = vector.load %arg3[%c0_2, %c0_3] : memref<16x128xf32, #tpu.memory_space<vmem>>, vector<16x128xf32>
    %5 = math.log %3 : vector<16x128xf32>
    %cst = arith.constant -1.000000e+02 : f32
    %6 = vector.broadcast %cst : f32 to vector<16x128xf32>
    %7 = arith.maximumf %5, %6 : vector<16x128xf32>
    %cst_4 = arith.constant 0.000000e+00 : f32
    %8 = vector.broadcast %cst_4 : f32 to vector<16x128xf32>
    %9 = arith.subf %8, %3 : vector<16x128xf32>
    %10 = math.log1p %9 : vector<16x128xf32>
    %cst_5 = arith.constant -1.000000e+02 : f32
    %11 = vector.broadcast %cst_5 : f32 to vector<16x128xf32>
    %12 = arith.maximumf %10, %11 : vector<16x128xf32>
    %13 = arith.subf %7, %12 : vector<16x128xf32>
    %14 = arith.mulf %4, %13 : vector<16x128xf32>
    %15 = arith.addf %14, %12 : vector<16x128xf32>
    %c1_i32 = arith.constant 1 : i32
    %16 = arith.muli %arg0, %c1_i32 : i32
    %17 = arith.addi %16, %arg1 : i32
    %c16_i32 = arith.constant 16 : i32
    %18 = arith.muli %17, %c16_i32 : i32
    %c16_i32_6 = arith.constant 16 : i32
    %19 = arith.subi %c16_i32_6, %18 : i32
    %c16_i32_7 = arith.constant 16 : i32
    %20 = arith.cmpi sge, %19, %c16_i32_7 : i32
    %21 = arith.extui %20 : i1 to i32
    %c0_i32_8 = arith.constant 0 : i32
    %22 = arith.cmpi ne, %21, %c0_i32_8 : i32
    scf.if %22 {
      %c0_11 = arith.constant 0 : index
      %c0_12 = arith.constant 0 : index
      %c0_13 = arith.constant 0 : index
      %26 = vector.load %arg4[%c0_11, %c0_12, %c0_13] : memref<1x8x128xf32, #tpu.memory_space<vmem>>, vector<1x8x128xf32>
      %27 = vector.shape_cast %15 : vector<16x128xf32> to vector<2x8x128xf32>
      %cst_14 = arith.constant dense<0.000000e+00> : vector<8x128xf32>
      %28 = vector.multi_reduction <add>, %27, %cst_14 [0] : vector<2x8x128xf32> to vector<8x128xf32>
      %29 = vector.shape_cast %28 : vector<8x128xf32> to vector<1x8x128xf32>
      %30 = arith.addf %26, %29 : vector<1x8x128xf32>
      %c0_15 = arith.constant 0 : index
      %c0_16 = arith.constant 0 : index
      %c0_17 = arith.constant 0 : index
      %31 = vector.load %arg4[%c0_15, %c0_16, %c0_17] : memref<1x8x128xf32, #tpu.memory_space<vmem>>, vector<1x8x128xf32>
      tpu.vector_store %arg4[%c0_15, %c0_16, %c0_17], %30 {strides = array<i32>} : memref<1x8x128xf32, #tpu.memory_space<vmem>>, vector<1x8x128xf32>,
    } else {
    }
    %c16_i32_9 = arith.constant 16 : i32
    %23 = arith.cmpi slt, %19, %c16_i32_9 : i32
    %24 = arith.extui %23 : i1 to i32
    %c0_i32_10 = arith.constant 0 : i32
    %25 = arith.cmpi ne, %24, %c0_i32_10 : i32
    scf.if %25 {
      %26 = tpu.iota {dimensions = array<i32: 0>} : vector<16x128xi32>
      %27 = vector.broadcast %19 : i32 to vector<16x128xi32>
      %28 = arith.cmpi slt, %26, %27 : vector<16x128xi32>
      %cst_11 = arith.constant 0.000000e+00 : f32
      %29 = vector.broadcast %cst_11 : f32 to vector<16x128xf32>
      %30 = arith.select %28, %15, %29 : vector<16x128xi1>, vector<16x128xf32>
      %c0_12 = arith.constant 0 : index
      %c0_13 = arith.constant 0 : index
      %c0_14 = arith.constant 0 : index
      %31 = vector.load %arg4[%c0_12, %c0_13, %c0_14] : memref<1x8x128xf32, #tpu.memory_space<vmem>>, vector<1x8x128xf32>
      %32 = vector.shape_cast %30 : vector<16x128xf32> to vector<2x8x128xf32>
      %cst_15 = arith.constant dense<0.000000e+00> : vector<8x128xf32>
      %33 = vector.multi_reduction <add>, %32, %cst_15 [0] : vector<2x8x128xf32> to vector<8x128xf32>
      %34 = vector.shape_cast %33 : vector<8x128xf32> to vector<1x8x128xf32>
      %35 = arith.addf %31, %34 : vector<1x8x128xf32>
      %c0_16 = arith.constant 0 : index
      %c0_17 = arith.constant 0 : index
      %c0_18 = arith.constant 0 : index
      %36 = vector.load %arg4[%c0_16, %c0_17, %c0_18] : memref<1x8x128xf32, #tpu.memory_space<vmem>>, vector<1x8x128xf32>
      tpu.vector_store %arg4[%c0_16, %c0_17, %c0_18], %35 {strides = array<i32>} : memref<1x8x128xf32, #tpu.memory_space<vmem>>, vector<1x8x128xf32>,
    } else {
    }
    return
  }
  func.func @transform_0(%arg0: i32, %arg1: i32) -> (i32, i32) {
    %c1_i32 = arith.constant 1 : i32
    %0 = arith.muli %arg0, %c1_i32 : i32
    %1 = arith.addi %0, %arg1 : i32
    %c0_i32 = arith.constant 0 : i32
    %2 = arith.minsi %1, %c0_i32 : i32
    %c0_i32_0 = arith.constant 0 : i32
    %c0_i32_1 = arith.constant 0 : i32
    return %2, %c0_i32_0 : i32, i32
  }
  func.func @transform_1(%arg0: i32, %arg1: i32) -> (i32, i32) {
    %c1_i32 = arith.constant 1 : i32
    %0 = arith.muli %arg0, %c1_i32 : i32
    %1 = arith.addi %0, %arg1 : i32
    %c0_i32 = arith.constant 0 : i32
    %2 = arith.minsi %1, %c0_i32 : i32
    %c0_i32_0 = arith.constant 0 : i32
    %c0_i32_1 = arith.constant 0 : i32
    return %2, %c0_i32_0 : i32, i32
  }
  func.func @transform_2(%arg0: i32, %arg1: i32) -> (i32, i32, i32) {
    %c0_i32 = arith.constant 0 : i32
    %c0_i32_0 = arith.constant 0 : i32
    %c0_i32_1 = arith.constant 0 : i32
    return %arg0, %c0_i32, %c0_i32_0 : i32, i32, i32
  }
}

</mosaic_0001>

<bundles_post_ra>
// kernel: tpu_custom_call.1
= control target key start
LH: loop header
LB: loop body
LE: loop exit
PB: predicated region body
PF: predicated region fallthrough
CT: control target
= control target key end

     0   :  { %7 = vsyncpa [#allocation3], 0  ;;  %s292_s0 = inlined_call_operand.hbm [shape: f32[16,128], index: 0, kind: input, shape index: {}]   ;;  %s293_s1 = inlined_call_operand.hbm [shape: f32[16,128], index: 1, kind: input, shape index: {}]   ;;  %s294_s2 = inlined_call_operand.hbm [shape: f32[1,8,128], index: 2, kind: output, shape index: {}]  }
   0x1   :  { %8 = vsyncpa [#allocation6], 0 }
   0x2   :  { %9 = vsyncpa [#allocation4], 0  ;;  %s236_s9 = smov [#allocation2]   ;;  %s164_s13 = scalar_lea.hbm %s292_s0, 256 }
   0x3   :  { %s21_s10 = sshll.u32 %s236_s9, 4  ;;  %p165_p0 = scmp.ne.s32.totalorder %s292_s0, %s164_s13  ;;  %s22_s10 = int_to_ptr.vmem [resolvable:$true] %s21_s10 }
   0x4   :  { %p168_p1 = scmp.lt.u32.totalorder %s164_s13, %s292_s0 }
   0x6   :  { %p170_p2 = pnand %p168_p1, %p165_p0 }
   0x8   :  { %173 = shalt.err (!%p170_p2)
}
   0x9   :  { %s174_s18 = scalar_lea.vmem %s22_s10, 256  ;;  %p179_p4 = scmp.lt.s32.totalorder %s22_s10, %s22_s10 }
   0xa   :  { %p175_p3 = scmp.ne.s32.totalorder %s22_s10, %s174_s18  ;;  %p180_p5 = scmp.lt.s32.totalorder %s174_s18, %s174_s18 }
   0xc   :  { %p181_p6 = por %p180_p5, %p179_p4 }
   0xe   :  { %p182_p7 = pnand %p181_p6, %p175_p3 }
  0x10   :  { %185 = shalt.err (!%p182_p7)
}
  0x11   :  { %s237_s19 = smov 128   ;;  %s238_s20 = smov 8  }
  0x12   :  { %27 = dma.hbm_to_vmem [thread:$0]  %s292_s0, 256, %s22_s10, [#allocation3], %s237_s19, %s237_s19, %s238_s20  }
  0x13   :  { %s239_s23 = smov [#allocation5]   ;;  %s186_s27 = scalar_lea.hbm %s293_s1, 256 }
  0x14   :  { %s39_s24 = sshll.u32 %s239_s23, 4  ;;  %p187_p8 = scmp.ne.s32.totalorder %s293_s1, %s186_s27  ;;  %s40_s24 = int_to_ptr.vmem [resolvable:$true] %s39_s24 }
  0x15   :  { %p190_p9 = scmp.lt.u32.totalorder %s186_s27, %s293_s1 }
  0x17   :  { %p192_p10 = pnand %p190_p9, %p187_p8 }
  0x19   :  { %195 = shalt.err (!%p192_p10)
}
  0x1a   :  { %s196_s4 = scalar_lea.vmem %s40_s24, 256  ;;  %p201_p12 = scmp.lt.s32.totalorder %s40_s24, %s40_s24 }
  0x1b   :  { %p197_p11 = scmp.ne.s32.totalorder %s40_s24, %s196_s4  ;;  %p202_p13 = scmp.lt.s32.totalorder %s196_s4, %s196_s4 }
  0x1d   :  { %p203_p0 = por %p202_p13, %p201_p12 }
  0x1f   :  { %p204_p1 = pnand %p203_p0, %p197_p11 }
  0x21   :  { %207 = shalt.err (!%p204_p1)
}
  0x22   :  { %45 = dma.hbm_to_vmem [thread:$0]  %s293_s1, 256, %s40_s24, [#allocation6], %s237_s19, %s237_s19, %s238_s20  }
  0x23   :  { %230 = dma.done.wait [#allocation3], 256  }
  0x24   :  { %231 = vsyncadd [#allocation3], 4294967040 }
  0x25   :  { %232 = dma.done.wait [#allocation6], 256  }
  0x26   :  { %233 = vsyncadd [#allocation6], 4294967040  ;;  %v65_v0 = vld [vmem:[#allocation2] sm:$0xff]  ;;  %v66_v1 = vld [vmem:[#allocation2 + $0x8] sm:$0xff]  ;;  %s240_s1 = smov [#allocation7]  }
  0x27   :  { %156 = vlog2.f32 %v65_v0  ;;  %v75_v2 = vsub.f32 0.0, %v65_v0  ;;  %v76_v3 = vsub.f32 0.0, %v66_v1  ;;  %v67_v27 = vld [vmem:[#allocation5] sm:$0xff]  ;;  %v68_v29 = vld [vmem:[#allocation5 + $0x8] sm:$0xff]  ;;  %s136_s6 = sshll.u32 %s240_s1, 4  ;;  %s137_s6 = int_to_ptr.vmem [resolvable:$true] %s136_s6 }
  0x28   :  { %158 = vlog2.f32 %v66_v1  ;;  %s208_s7 = scalar_lea.vmem %s137_s6, 128  ;;  %p213_p3 = scmp.lt.s32.totalorder %s137_s6, %s137_s6 }
  0x29   :  { %v77_v4 = vadd.f32 1.0, %v75_v2  ;;  %v86_v5 = vadd.f32 1.0, %v76_v3  ;;  %v80_v6 = vmul.f32 -0.5, %v75_v2  ;;  %v89_v7 = vmul.f32 -0.5, %v76_v3  ;;  %p209_p2 = scmp.ne.s32.totalorder %s137_s6, %s208_s7  ;;  %p214_p4 = scmp.lt.s32.totalorder %s208_s7, %s208_s7 }
  0x2a   :  { %v83_v10 = vand.u32 2147483647, %v75_v2  ;;  %v92_v13 = vand.u32 2147483647, %v76_v3 }
  0x2b   :  { %160 = vlog2.f32 %v77_v4  ;;  %v81_v8 = vadd.f32 1.0, %v80_v6  ;;  %v90_v11 = vadd.f32 1.0, %v89_v7  ;;  %p215_p5 = por %p214_p4, %p213_p3 }
  0x2c   :  { %162 = vlog2.f32 %v86_v5  ;;  %vm84_vm0 = vcmp.lt.f32.partialorder %v83_v10, 0.0004427343  ;;  %vm93_vm1 = vcmp.lt.f32.partialorder %v92_v13, 0.0004427343 }
  0x2d   :  { %v82_v16 = vmul.f32 %v81_v8, %v75_v2  ;;  %v91_v18 = vmul.f32 %v90_v11, %v76_v3  ;;  %p216_p6 = pnand %p215_p5, %p209_p2 }
  0x31   :  { %v157_v9 = vpop.eup %156 }
  0x32   :  { %v159_v12 = vpop.eup %158  ;;  %v70_v14 = vmul.f32 0.6931472, %v157_v9 }
  0x33   :  { %v72_v15 = vmul.f32 0.6931472, %v159_v12 }
  0x34   :  { %v73_v21 = vmax.f32 %v70_v14, -100.0 }
  0x35   :  { %v161_v17 = vpop.eup %160  ;;  %v74_v23 = vmax.f32 %v72_v15, -100.0 }
  0x36   :  { %v163_v19 = vpop.eup %162  ;;  %v79_v20 = vmul.f32 0.6931472, %v161_v17 }
  0x37   :  { %v88_v22 = vmul.f32 0.6931472, %v163_v19 }
  0x38   :  { %v85_v24 = vsel %vm84_vm0, %v82_v16, %v79_v20 }
  0x39   :  { %v94_v25 = vsel %vm93_vm1, %v91_v18, %v88_v22  ;;  %v95_v26 = vmax.f32 %v85_v24, -100.0 }
  0x3a   :  { %v96_v28 = vmax.f32 %v94_v25, -100.0 }
  0x3b   :  { %v97_v30 = vsub.f32 %v73_v21, %v95_v26 }
  0x3c   :  { %v98_v31 = vsub.f32 %v74_v23, %v96_v28 }
  0x3d   :  { %v99_v32 = vmul.f32 %v97_v30, %v67_v27 }
  0x3e   :  { %v100_v33 = vmul.f32 %v98_v31, %v68_v29 }
  0x3f   :  { %v101_v34 = vadd.f32 %v99_v32, %v95_v26 }
  0x40   :  { %v102_v35 = vadd.f32 %v100_v33, %v96_v28 }
  0x42   :  { %v111_v36 = vadd.f32 %v102_v35, %v101_v34 }
  0x44   :  { %113 = vst [vmem:[#allocation7] sm:$0xff] %v111_v36 }
  0x45   :  { %219 = shalt.err (!%p216_p6)
}
  0x46   :  { %s220_s10 = scalar_lea.hbm %s294_s2, 128 }
  0x47   :  { %p221_p7 = scmp.ne.s32.totalorder %s294_s2, %s220_s10  ;;  %p224_p8 = scmp.lt.u32.totalorder %s220_s10, %s294_s2 }
  0x49   :  { %p226_p9 = pnand %p224_p8, %p221_p7 }
  0x4b   :  { %229 = shalt.err (!%p226_p9)
}
  0x4c   :  { %139 = dma.vmem_to_hbm [thread:$0]  %s137_s6, 128, %s294_s2, [#allocation4]  }
  0x4d   :  { %234 = dma.done.wait [#allocation4], 128  }
  0x4e   :  { %235 = vsyncadd [#allocation4], 4294967168 }
  0x4f   :  { %143 = vsyncpa [#allocation3], 1 }
  0x50   :  { %144 = vsyncpa [#allocation6], 1 }
  0x51   :  { %145 = vsyncpa [#allocation4], 1 }

</bundles_post_ra>
